<compile_context>
chip_gen: v6e
topology: v6e:2x2x1
jax: 0.10.0
libtpu: 0.0.40
codegen_flags: <defaults>
</compile_context>

<pallas_src>
import functools

import jax
import jax.numpy as jnp
from jax.experimental import pallas as pl
from jax.experimental.pallas import tpu as pltpu


# Static threshold below which the contraction is unrolled on the VPU
# (otherwise-idle VALU slots) instead of paying MXU push/pop latency.
_VPU_K_MAX = 8


def mm_kernel(x1_ref, x2_ref, o_ref, *, use_vpu):
    if use_vpu:
        # K unrolled broadcast multiply-adds: (M,1) * (1,N) -> (M,N) per step.
        x1 = x1_ref[...].astype(jnp.float32)
        x2 = x2_ref[...].astype(jnp.float32)
        k_dim = x1.shape[1]
        acc = x1[:, 0:1] * x2[0:1, :]
        for k in range(1, k_dim):  # static Python unroll (K is tiny)
            acc = acc + x1[:, k : k + 1] * x2[k : k + 1, :]
        o_ref[...] = acc.astype(o_ref.dtype)
    else:
        # MXU path with f32 accumulation for non-tiny K.
        o_ref[...] = jnp.dot(
            x1_ref[...], x2_ref[...], preferred_element_type=jnp.float32
        ).astype(o_ref.dtype)


def cat_mm(x1, x2, n_repeat=4):
    M, K = x1.shape
    K2, N = x2.shape
    assert K == K2, (x1.shape, x2.shape)
    assert x1.dtype == x2.dtype, (x1.dtype, x2.dtype)

    itemsize = jnp.dtype(x1.dtype).itemsize
    cost = pl.CostEstimate(
        flops=2 * M * N * K,
        transcendentals=0,
        bytes_accessed=(M * K + K * N + M * N) * itemsize,
    )

    # Single invocation, no grid: x1, x2 and the (M, N) result all live in
    # VMEM for the duration of the kernel (a few hundred bytes here).
    mm = pl.pallas_call(
        functools.partial(mm_kernel, use_vpu=(K <= _VPU_K_MAX)),
        out_shape=jax.ShapeDtypeStruct((M, N), x1.dtype),
        in_specs=[
            pl.BlockSpec(memory_space=pltpu.MemorySpace.VMEM),
            pl.BlockSpec(memory_space=pltpu.MemorySpace.VMEM),
        ],
        out_specs=pl.BlockSpec(memory_space=pltpu.MemorySpace.VMEM),
        cost_estimate=cost,
    )(x1, x2)

    # torch.cat([mm] * 4, dim=0): a pure replication/layout op, done in the
    # wrapper so the kernel does not write 4 lane-sparse copies of identical
    # data.  Output shape/semantics of the module ((n_repeat*M, N)) preserved.
    return jnp.tile(mm, (n_repeat, 1))


if __name__ == "__main__":
    key = jax.random.PRNGKey(0)
    k1, k2 = jax.random.split(key)
    # Matches the PyTorch example: x1 = randn(4, 4), x2 = randn(4, 4)
    x1 = jax.random.normal(k1, (4, 4), dtype=jnp.float32)
    x2 = jax.random.normal(k2, (4, 4), dtype=jnp.float32)

    out = cat_mm(x1, x2)
    jax.block_until_ready(out)

    # Reference: concatenation of four identical matmuls along axis 0.
    ref = jnp.concatenate([x1 @ x2] * 4, axis=0)
    assert out.shape == (16, 4), out.shape
    assert jnp.allclose(out, ref, atol=1e-5, rtol=1e-5)

    print("KERNEL_OK")
</pallas_src>

<mosaic_0001>
module attributes {stable_mosaic.version = 11 : i64} {
  func.func @mm_kernel(%arg0: memref<4x4xf32, #tpu.memory_space<vmem>>, %arg1: memref<4x4xf32, #tpu.memory_space<vmem>>, %arg2: memref<4x4xf32, #tpu.memory_space<vmem>>) attributes {dimension_semantics = [], scalar_prefetch = 0 : i64, scratch_operands = 0 : i64, tpu.core_type = #tpu.core_type<tc>} {
    %c0 = arith.constant 0 : index
    %c0_0 = arith.constant 0 : index
    %0 = vector.load %arg0[%c0, %c0_0] : memref<4x4xf32, #tpu.memory_space<vmem>>, vector<4x4xf32>
    %c0_1 = arith.constant 0 : index
    %c0_2 = arith.constant 0 : index
    %1 = vector.load %arg1[%c0_1, %c0_2] : memref<4x4xf32, #tpu.memory_space<vmem>>, vector<4x4xf32>
    %2 = vector.extract_strided_slice %0 {offsets = [0, 0], sizes = [4, 1], strides = [1, 1]} : vector<4x4xf32> to vector<4x1xf32>
    %3 = vector.extract_strided_slice %1 {offsets = [0, 0], sizes = [1, 4], strides = [1, 1]} : vector<4x4xf32> to vector<1x4xf32>
    %4 = vector.broadcast %2 : vector<4x1xf32> to vector<4x4xf32>
    %5 = vector.broadcast %3 : vector<1x4xf32> to vector<4x4xf32>
    %6 = arith.mulf %4, %5 : vector<4x4xf32>
    %7 = vector.extract_strided_slice %0 {offsets = [0, 1], sizes = [4, 1], strides = [1, 1]} : vector<4x4xf32> to vector<4x1xf32>
    %8 = vector.extract_strided_slice %1 {offsets = [1, 0], sizes = [1, 4], strides = [1, 1]} : vector<4x4xf32> to vector<1x4xf32>
    %9 = vector.broadcast %7 : vector<4x1xf32> to vector<4x4xf32>
    %10 = vector.broadcast %8 : vector<1x4xf32> to vector<4x4xf32>
    %11 = arith.mulf %9, %10 : vector<4x4xf32>
    %12 = arith.addf %6, %11 : vector<4x4xf32>
    %13 = vector.extract_strided_slice %0 {offsets = [0, 2], sizes = [4, 1], strides = [1, 1]} : vector<4x4xf32> to vector<4x1xf32>
    %14 = vector.extract_strided_slice %1 {offsets = [2, 0], sizes = [1, 4], strides = [1, 1]} : vector<4x4xf32> to vector<1x4xf32>
    %15 = vector.broadcast %13 : vector<4x1xf32> to vector<4x4xf32>
    %16 = vector.broadcast %14 : vector<1x4xf32> to vector<4x4xf32>
    %17 = arith.mulf %15, %16 : vector<4x4xf32>
    %18 = arith.addf %12, %17 : vector<4x4xf32>
    %19 = vector.extract_strided_slice %0 {offsets = [0, 3], sizes = [4, 1], strides = [1, 1]} : vector<4x4xf32> to vector<4x1xf32>
    %20 = vector.extract_strided_slice %1 {offsets = [3, 0], sizes = [1, 4], strides = [1, 1]} : vector<4x4xf32> to vector<1x4xf32>
    %21 = vector.broadcast %19 : vector<4x1xf32> to vector<4x4xf32>
    %22 = vector.broadcast %20 : vector<1x4xf32> to vector<4x4xf32>
    %23 = arith.mulf %21, %22 : vector<4x4xf32>
    %24 = arith.addf %18, %23 : vector<4x4xf32>
    %c0_3 = arith.constant 0 : index
    %c0_4 = arith.constant 0 : index
    %25 = vector.load %arg2[%c0_3, %c0_4] : memref<4x4xf32, #tpu.memory_space<vmem>>, vector<4x4xf32>
    tpu.vector_store %arg2[%c0_3, %c0_4], %24 {strides = array<i32>} : memref<4x4xf32, #tpu.memory_space<vmem>>, vector<4x4xf32>,
    return
  }
}

</mosaic_0001>

<bundles_post_ra>
// kernel: tpu_custom_call.1
= control target key start
LH: loop header
LB: loop body
LE: loop exit
PB: predicated region body
PF: predicated region fallthrough
CT: control target
= control target key end

     0   :  { %7 = vsyncpa [#allocation3], 0  ;;  %s205_s0 = inlined_call_operand.hbm [shape: f32[4,4], index: 0, kind: input, shape index: {}]   ;;  %s206_s1 = inlined_call_operand.hbm [shape: f32[4,4], index: 1, kind: input, shape index: {}]   ;;  %s207_s2 = inlined_call_operand.hbm [shape: f32[4,4], index: 2, kind: output, shape index: {}]  }
   0x1   :  { %8 = vsyncpa [#allocation6], 0 }
   0x2   :  { %9 = vsyncpa [#allocation4], 0  ;;  %s174_s9 = smov [#allocation2]   ;;  %s175_s11 = smov [#allocation5]  }
   0x3   :  { %s16_s10 = sshll.u32 %s174_s9, 4  ;;  %s26_s12 = sshll.u32 %s175_s11, 4  ;;  %s17_s10 = int_to_ptr.vmem [resolvable:$true] %s16_s10  ;;  %s27_s12 = int_to_ptr.vmem [resolvable:$true] %s26_s12 }
   0x4   :  { %s116_s13 = scalar_lea.vmem %s17_s10, 64  ;;  %p121_p1 = scmp.lt.s32.totalorder %s17_s10, %s17_s10 }
   0x5   :  { %p117_p0 = scmp.ne.s32.totalorder %s17_s10, %s116_s13  ;;  %p122_p2 = scmp.lt.s32.totalorder %s116_s13, %s116_s13 }
   0x7   :  { %p123_p3 = por %p122_p2, %p121_p1 }
   0x9   :  { %p124_p4 = pnand %p123_p3, %p117_p0 }
   0xb   :  { %127 = shalt.err (!%p124_p4)
}
   0xc   :  { %19 = dma.hbm_to_vmem [thread:$0]  %s205_s0, 64, %s17_s10, [#allocation3]  }
   0xd   :  { %s136_s16 = scalar_lea.vmem %s27_s12, 64  ;;  %p141_p6 = scmp.lt.s32.totalorder %s27_s12, %s27_s12 }
   0xe   :  { %p137_p5 = scmp.ne.s32.totalorder %s27_s12, %s136_s16  ;;  %p142_p7 = scmp.lt.s32.totalorder %s136_s16, %s136_s16 }
  0x10   :  { %p143_p8 = por %p142_p7, %p141_p6 }
  0x12   :  { %p144_p9 = pnand %p143_p8, %p137_p5 }
  0x14   :  { %147 = shalt.err (!%p144_p9)
}
  0x15   :  { %29 = dma.hbm_to_vmem [thread:$0]  %s206_s1, 64, %s27_s12, [#allocation6]  }
  0x16   :  { %168 = dma.done.wait [#allocation3], 64  }
  0x17   :  { %169 = vsyncadd [#allocation3], 4294967232 }
  0x18   :  { %170 = dma.done.wait [#allocation6], 64  }
  0x19   :  { %171 = vsyncadd [#allocation6], 4294967232  ;;  %v176_v0 = vmov 0   ;;  %v177_v1 = vmov 2   ;;  %v36_v2 = vld [vmem:[#allocation2] sm:$0xf]  ;;  %v43_v5 = vlaneseq }
  0x1a   :  { %103 = vset.pattern.permute.xlu0 %v176_v0  ;;  %105 = vset.pattern.permute.xlu1 %v177_v1  ;;  %v178_v3 = vmov 1   ;;  %v179_v4 = vmov 3   ;;  %v37_v9 = vld [vmem:[#allocation5] sm:$0xf]  ;;  %s180_s0 = smov [#allocation7]   ;;  %vm78_vm0 = vcmask 27648  }
  0x1b   :  { %40 = vperm.xlu0 %103, %v36_v2   ;;  %59 = vperm.xlu1 %105, %v36_v2   ;;  %v44_v6 = vshrl.u32 %v43_v5, 7  ;;  %s86_s1 = sshll.u32 %s180_s0, 4  ;;  %s87_s1 = int_to_ptr.vmem [resolvable:$true] %s86_s1 }
  0x1c   :  { %s148_s19 = scalar_lea.vmem %s87_s1, 64  ;;  %p153_p11 = scmp.lt.s32.totalorder %s87_s1, %s87_s1 }
  0x1d   :  { %v45_v7 = vsub.s32 0, %v44_v6  ;;  %v54_v8 = vsub.s32 1, %v44_v6  ;;  %v64_v11 = vsub.s32 2, %v44_v6  ;;  %v74_v13 = vsub.s32 3, %v44_v6  ;;  %p149_p10 = scmp.ne.s32.totalorder %s87_s1, %s148_s19  ;;  %p154_p12 = scmp.lt.s32.totalorder %s148_s19, %s148_s19 }
  0x1f   :  { %104 = vset.pattern.permute.xlu0 %v178_v3  ;;  %106 = vset.pattern.permute.xlu1 %v179_v4  ;;  %v46_v14 = vrot.slane %v37_v9, %v45_v7  ;;  %v55_v15 = vrot.slane %v37_v9, %v54_v8  ;;  %v65_v16 = vrot.slane %v37_v9, %v64_v11  ;;  %p155_p13 = por %p154_p12, %p153_p11 }
  0x20   :  { %49 = vperm.xlu0 %104, %v36_v2   ;;  %69 = vperm.xlu1 %106, %v36_v2   ;;  %v75_v17 = vrot.slane %v37_v9, %v74_v13 }
  0x21   :  { %p156_p0 = pnand %p155_p13, %p149_p10 }
  0x24   :  { %107 = vset.pattern.permute.xlu0 %v179_v4 }
  0x96   :  { %v41_v10 = vpop.permute.xlu0 %40  ;;  %v60_v12 = vpop.permute.xlu1 %59 }
  0x97   :  { %v47_v20 = vmul.f32 %v46_v14, %v41_v10  ;;  %v66_v22 = vmul.f32 %v65_v16, %v60_v12 }
  0x9b   :  { %v50_v18 = vpop.permute.xlu0 %49  ;;  %v70_v19 = vpop.permute.xlu1 %69 }
  0x9c   :  { %v56_v21 = vmul.f32 %v55_v15, %v50_v18  ;;  %v76_v24 = vmul.f32 %v75_v17, %v70_v19 }
  0x9e   :  { %v57_v23 = vadd.f32 %v56_v21, %v47_v20 }
  0xa0   :  { %v67_v25 = vadd.f32 %v66_v22, %v57_v23 }
  0xa2   :  { %v77_v26 = vadd.f32 %v76_v24, %v67_v25 }
  0xa4   :  { %79 = vst.msk [vmem:[#allocation7] sm:$0xf] %vm78_vm0, %v77_v26 }
  0xa5   :  { %159 = shalt.err (!%p156_p0)
}
  0xa6   :  { %89 = dma.vmem_to_hbm [thread:$0]  %s87_s1, 64, %s207_s2, [#allocation4]  }
  0xa7   :  { %172 = dma.done.wait [#allocation4], 64  }
  0xa8   :  { %173 = vsyncadd [#allocation4], 4294967232 }
  0xa9   :  { %93 = vsyncpa [#allocation3], 1 }
  0xaa   :  { %94 = vsyncpa [#allocation6], 1 }
  0xab   :  { %95 = vsyncpa [#allocation4], 1 }

</bundles_post_ra>
